<compile_context>
chip_gen: v7x
topology: tpu7x:2x2x1
jax: 0.10.0
libtpu: 0.0.40
codegen_flags: <defaults>
</compile_context>

<pallas_src>
import jax
import jax.numpy as jnp
from jax.experimental import pallas as pl
from jax.experimental.pallas import tpu as pltpu

IN_FEATURES = 41
HIDDEN = 64
OUT_FEATURES = 41

DEFAULT_TILE_B = 8192   # rows per grid step (multiple of the sublane tile)
VMEM_LIMIT_BYTES = 48 * 1024 * 1024


def _round_up(n, m):
    return ((n + m - 1) // m) * m


def _choose_tile_b(batch, requested, sublane):
    """Pick a batch tile: big (amortize ~0.35us/step overhead), sublane-aligned,
    but keep >=4 grid steps for large batches so both v7x TensorCores get work."""
    b_aligned = _round_up(batch, sublane)
    tile = min(int(requested), b_aligned)
    if b_aligned >= 4 * 1024:
        quarter = _round_up((b_aligned + 3) // 4, sublane)
        tile = min(tile, max(1024, quarter))
    return max(sublane, _round_up(tile, sublane))


def _mlp_kernel(x_ref, w1_ref, b1_ref, w2_ref, b2_ref, o_ref):
    # bf16 MXU operands, f32 accumulation; hidden activation never leaves VMEM.
    x = x_ref[...].astype(jnp.bfloat16)
    h = jnp.dot(x, w1_ref[...], preferred_element_type=jnp.float32) + b1_ref[...]
    h = jnp.maximum(h, 0.0).astype(jnp.bfloat16)           # ReLU, then bf16 for MXU
    y = jnp.dot(h, w2_ref[...], preferred_element_type=jnp.float32) + b2_ref[...]
    o_ref[...] = y.astype(o_ref.dtype)


def extender_model_forward(x, w1, b1, w2, b2, *, tile_b=DEFAULT_TILE_B):
    """x: (B, 41) -> (B, 41) in x.dtype. Matches PyTorch Linear(41,64)+ReLU+Linear(64,41)
    with weights stored as (in_features, out_features), i.e. y = relu(x@W1+b1)@W2+b2."""
    B, F = x.shape
    assert F == IN_FEATURES, f"expected {IN_FEATURES} input features, got {F}"

    # One-time tiny casts: MXU operands in bf16, biases in f32.
    w1 = w1.astype(jnp.bfloat16)
    w2 = w2.astype(jnp.bfloat16)
    b1 = b1.astype(jnp.float32)
    b2 = b2.astype(jnp.float32)

    # Minimum sublane tile depends on activation dtype (f32:8, bf16:16, int8/fp8:32).
    sublane = {4: 8, 2: 16, 1: 32}.get(jnp.dtype(x.dtype).itemsize, 8)
    tile_b = _choose_tile_b(B, tile_b, sublane)

    # Ragged last block: Pallas pads OOB reads and masks OOB writes, so no wrapper
    # pad/slice HBM copies are needed (rows are independent through both matmuls).
    grid = (pl.cdiv(B, tile_b),)

    act_bytes = jnp.dtype(x.dtype).itemsize
    param_bytes = (
        2 * (IN_FEATURES * HIDDEN + HIDDEN * OUT_FEATURES)   # bf16 weights
        + 4 * (HIDDEN + OUT_FEATURES)                         # f32 biases
    )
    cost = pl.CostEstimate(
        flops=2 * B * (IN_FEATURES * HIDDEN + HIDDEN * OUT_FEATURES),
        transcendentals=0,
        bytes_accessed=(
            B * IN_FEATURES * act_bytes
            + B * OUT_FEATURES * act_bytes
            + param_bytes
        ),
    )

    return pl.pallas_call(
        _mlp_kernel,
        out_shape=jax.ShapeDtypeStruct((B, OUT_FEATURES), x.dtype),
        grid_spec=pltpu.PrefetchScalarGridSpec(
            num_scalar_prefetch=0,
            grid=grid,
            in_specs=[
                # x: tiled along batch, full feature width.
                pl.BlockSpec((tile_b, IN_FEATURES), lambda i: (i, 0)),
                # Parameters: constant index_map -> fetched once, resident in VMEM.
                pl.BlockSpec((IN_FEATURES, HIDDEN), lambda i: (0, 0)),
                pl.BlockSpec((1, HIDDEN), lambda i: (0, 0)),
                pl.BlockSpec((HIDDEN, OUT_FEATURES), lambda i: (0, 0)),
                pl.BlockSpec((1, OUT_FEATURES), lambda i: (0, 0)),
            ],
            out_specs=pl.BlockSpec((tile_b, OUT_FEATURES), lambda i: (i, 0)),
        ),
        compiler_params=pltpu.CompilerParams(
            # Grid steps are independent -> megacore-shardable on v7x.
            dimension_semantics=("parallel",),
            # Double-buffered (tile_b,41)-in + (tile_b,41)-out + f32/bf16 temporaries
            # (each padded to 128 lanes) is ~30 MiB at tile_b=8192; 48 MiB fits
            # comfortably under v7x's 64 MiB VMEM and is trivial on v5e/v6e's 128 MiB.
            vmem_limit_bytes=VMEM_LIMIT_BYTES,
        ),
        cost_estimate=cost,
    )(x, w1, b1, w2, b2)


def init_params(key):
    """Deterministic init mimicking PyTorch's default Linear init
    (uniform(-1/sqrt(fan_in), 1/sqrt(fan_in)))."""
    k1, k2, k3, k4 = jax.random.split(key, 4)
    lim1 = 1.0 / jnp.sqrt(jnp.float32(IN_FEATURES))
    lim2 = 1.0 / jnp.sqrt(jnp.float32(HIDDEN))
    w1 = jax.random.uniform(k1, (IN_FEATURES, HIDDEN), jnp.float32, -lim1, lim1)
    b1 = jax.random.uniform(k2, (1, HIDDEN), jnp.float32, -lim1, lim1)
    w2 = jax.random.uniform(k3, (HIDDEN, OUT_FEATURES), jnp.float32, -lim2, lim2)
    b2 = jax.random.uniform(k4, (1, OUT_FEATURES), jnp.float32, -lim2, lim2)
    return w1, b1, w2, b2


def _reference_f32(x, w1, b1, w2, b2):
    return jnp.maximum(x @ w1 + b1, 0.0) @ w2 + b2


if __name__ == "__main__":
    key = jax.random.PRNGKey(0)
    kx, kx2, kp = jax.random.split(key, 3)
    w1, b1, w2, b2 = init_params(kp)

    # bf16 MXU operands -> validate against the f32 reference with a loosened
    # tolerance (expected relative error ~0.5% with fan-in 41/64, f32 accumulation).
    TOL = dict(atol=2e-2, rtol=2e-2)

    # Small batch: single tile, single grid step.
    B = 8
    x = jax.random.normal(kx, (B, IN_FEATURES), jnp.float32)
    out = jax.block_until_ready(extender_model_forward(x, w1, b1, w2, b2))
    ref = _reference_f32(x, w1, b1, w2, b2)
    assert out.shape == (B, OUT_FEATURES)
    assert jnp.allclose(out, ref, **TOL), float(jnp.max(jnp.abs(out - ref)))

    # Ragged batch with a multi-step grid (exercises tiling + masked last block).
    B2 = 300
    x2 = jax.random.normal(kx2, (B2, IN_FEATURES), jnp.float32)
    out2 = jax.block_until_ready(
        extender_model_forward(x2, w1, b1, w2, b2, tile_b=128)
    )
    ref2 = _reference_f32(x2, w1, b1, w2, b2)
    assert out2.shape == (B2, OUT_FEATURES)
    assert jnp.allclose(out2, ref2, **TOL), float(jnp.max(jnp.abs(out2 - ref2)))

    print("KERNEL_OK")
</pallas_src>

<mosaic_0001>
module attributes {stable_mosaic.version = 11 : i64} {
  func.func @_mlp_kernel(%arg0: i32, %arg1: memref<8x41xf32, #tpu.memory_space<vmem>>, %arg2: memref<41x64xbf16, #tpu.memory_space<vmem>>, %arg3: memref<1x64xf32, #tpu.memory_space<vmem>>, %arg4: memref<64x41xbf16, #tpu.memory_space<vmem>>, %arg5: memref<1x41xf32, #tpu.memory_space<vmem>>, %arg6: memref<8x41xf32, #tpu.memory_space<vmem>>) attributes {dimension_semantics = [#tpu.dimension_semantics<parallel>], iteration_bounds = array<i64: 1>, scalar_prefetch = 0 : i64, scratch_operands = 0 : i64, tpu.core_type = #tpu.core_type<tc>, window_params = [{transform_indices = @transform_0, window_bounds = array<i64: 8, 41>}, {pipeline_mode = #tpu.pipeline_mode<synchronous>, transform_indices = @transform_1, window_bounds = array<i64: 41, 64>}, {pipeline_mode = #tpu.pipeline_mode<synchronous>, transform_indices = @transform_2, window_bounds = array<i64: 1, 64>}, {pipeline_mode = #tpu.pipeline_mode<synchronous>, transform_indices = @transform_3, window_bounds = array<i64: 64, 41>}, {pipeline_mode = #tpu.pipeline_mode<synchronous>, transform_indices = @transform_4, window_bounds = array<i64: 1, 41>}, {transform_indices = @transform_5, window_bounds = array<i64: 8, 41>}]} {
    %c0 = arith.constant 0 : index
    %c0_0 = arith.constant 0 : index
    %0 = vector.load %arg1[%c0, %c0_0] : memref<8x41xf32, #tpu.memory_space<vmem>>, vector<8x41xf32>
    %1 = arith.truncf %0 : vector<8x41xf32> to vector<8x41xbf16>
    %c0_1 = arith.constant 0 : index
    %c0_2 = arith.constant 0 : index
    %2 = vector.load %arg2[%c0_1, %c0_2] : memref<41x64xbf16, #tpu.memory_space<vmem>>, vector<41x64xbf16>
    %cst = arith.constant dense<0.000000e+00> : vector<8x64xf32>
    %3 = tpu.matmul %1, %2, %cst {dimension_numbers = #tpu.dot_dimension_numbers<[1], [0], [0], [1], [0, 0, 1, 1], [], []>} : vector<8x41xbf16>, vector<41x64xbf16>, vector<8x64xf32> -> vector<8x64xf32>
    %c0_3 = arith.constant 0 : index
    %c0_4 = arith.constant 0 : index
    %4 = vector.load %arg3[%c0_3, %c0_4] : memref<1x64xf32, #tpu.memory_space<vmem>>, vector<1x64xf32>
    %5 = vector.broadcast %4 : vector<1x64xf32> to vector<8x64xf32>
    %6 = arith.addf %3, %5 : vector<8x64xf32>
    %cst_5 = arith.constant 0.000000e+00 : f32
    %7 = vector.broadcast %cst_5 : f32 to vector<8x64xf32>
    %8 = arith.maximumf %6, %7 : vector<8x64xf32>
    %9 = arith.truncf %8 : vector<8x64xf32> to vector<8x64xbf16>
    %c0_6 = arith.constant 0 : index
    %c0_7 = arith.constant 0 : index
    %10 = vector.load %arg4[%c0_6, %c0_7] : memref<64x41xbf16, #tpu.memory_space<vmem>>, vector<64x41xbf16>
    %cst_8 = arith.constant dense<0.000000e+00> : vector<8x41xf32>
    %11 = tpu.matmul %9, %10, %cst_8 {dimension_numbers = #tpu.dot_dimension_numbers<[1], [0], [0], [1], [0, 0, 1, 1], [], []>} : vector<8x64xbf16>, vector<64x41xbf16>, vector<8x41xf32> -> vector<8x41xf32>
    %c0_9 = arith.constant 0 : index
    %c0_10 = arith.constant 0 : index
    %12 = vector.load %arg5[%c0_9, %c0_10] : memref<1x41xf32, #tpu.memory_space<vmem>>, vector<1x41xf32>
    %13 = vector.broadcast %12 : vector<1x41xf32> to vector<8x41xf32>
    %14 = arith.addf %11, %13 : vector<8x41xf32>
    %c0_11 = arith.constant 0 : index
    %c0_12 = arith.constant 0 : index
    %15 = vector.load %arg6[%c0_11, %c0_12] : memref<8x41xf32, #tpu.memory_space<vmem>>, vector<8x41xf32>
    tpu.vector_store %arg6[%c0_11, %c0_12], %14 {strides = array<i32>} : memref<8x41xf32, #tpu.memory_space<vmem>>, vector<8x41xf32>,
    return
  }
  func.func @transform_0(%arg0: i32) -> (i32, i32) {
    %c0_i32 = arith.constant 0 : i32
    %c0_i32_0 = arith.constant 0 : i32
    return %arg0, %c0_i32 : i32, i32
  }
  func.func @transform_1(%arg0: i32) -> (i32, i32) {
    %c0_i32 = arith.constant 0 : i32
    %c0_i32_0 = arith.constant 0 : i32
    %c0_i32_1 = arith.constant 0 : i32
    return %c0_i32, %c0_i32_0 : i32, i32
  }
  func.func @transform_2(%arg0: i32) -> (i32, i32) {
    %c0_i32 = arith.constant 0 : i32
    %c0_i32_0 = arith.constant 0 : i32
    %c0_i32_1 = arith.constant 0 : i32
    return %c0_i32, %c0_i32_0 : i32, i32
  }
  func.func @transform_3(%arg0: i32) -> (i32, i32) {
    %c0_i32 = arith.constant 0 : i32
    %c0_i32_0 = arith.constant 0 : i32
    %c0_i32_1 = arith.constant 0 : i32
    return %c0_i32, %c0_i32_0 : i32, i32
  }
  func.func @transform_4(%arg0: i32) -> (i32, i32) {
    %c0_i32 = arith.constant 0 : i32
    %c0_i32_0 = arith.constant 0 : i32
    %c0_i32_1 = arith.constant 0 : i32
    return %c0_i32, %c0_i32_0 : i32, i32
  }
  func.func @transform_5(%arg0: i32) -> (i32, i32) {
    %c0_i32 = arith.constant 0 : i32
    %c0_i32_0 = arith.constant 0 : i32
    return %arg0, %c0_i32 : i32, i32
  }
}

</mosaic_0001>

<bundles_post_ra>
// kernel: tpu_custom_call.1
= control target key start
LH: loop header
LB: loop body
LE: loop exit
PB: predicated region body
PF: predicated region fallthrough
CT: control target
= control target key end

     0   :  { %v282_v1 = vmov 0.0   ;;  %vm58_vm0 = vcmask 1043456   ;;  %vm59_vm1 = vcmask 1044480   ;;  %v283_v5 = vmov 65535   ;;  %s360_s0 = inlined_call_operand.vmem [shape: f32[8,41], index: 0, kind: input, shape index: {}]   ;;  %s361_s1 = inlined_call_operand.vmem [shape: bf16[41,64], index: 1, kind: input, shape index: {}]   ;;  %s362_s2 = inlined_call_operand.vmem [shape: f32[1,64], index: 2, kind: input, shape index: {}]   ;;  %s363_s3 = inlined_call_operand.vmem [shape: bf16[64,41], index: 3, kind: input, shape index: {}]   ;;  %s364_s4 = inlined_call_operand.vmem [shape: f32[1,41], index: 4, kind: input, shape index: {}]   ;;  %s365_s5 = inlined_call_operand.hbm [shape: f32[8,41], index: 5, kind: output, shape index: {}]  }
   0x1   :  { %v251_v0 = vld [vmem:[%s361_s1] sm:$0xff]   ;;  %225 = vmatprep.subr.bf16.mxu0 %v282_v1  ;;  %v252_v2 = vld [vmem:[%s361_s1 + $0x8] sm:$0xff]   ;;  %235 = vmatprep.subr.bf16.mxu1 %v282_v1  ;;  %v253_v3 = vld [vmem:[%s361_s1 + $0x10] sm:$0x1f]   ;;  %v60_v6 = vsel %vm58_vm0, 4294967295, %v283_v5  ;;  %vm284_vm2 = vmmov 0  }
   0x2   :  { %226 = vmatpush3.bf16.msra.mxu0 %v251_v0  ;;  %v254_v4 = vld [vmem:[%s363_s3] sm:$0xff]   ;;  %231 = vmatprep.mubr.msk.bf16.mxu0 %vm284_vm2, %v282_v1  ;;  %v61_v7 = vsel %vm59_vm1, %v60_v6, 0  ;;  %v255_v8 = vld [vmem:[%s363_s3 + $0x8] sm:$0xff]  }
   0x3   :  { %227 = vmatprep.subr.bf16.mxu0 %v282_v1  ;;  %243 = vmatprep.mubr.msk.bf16.mxu1 %vm284_vm2, %v282_v1  ;;  %v63_v9 = vand.u32 %v253_v3, %v61_v7  ;;  %v22_v10 = vld [vmem:[%s360_s0] sm:$0xff] }
   0x4   :  { %236 = vmatpush3.bf16.msra.mxu1 %v254_v4 }
   0x5   :  { %237 = vmatprep.subr.bf16.mxu1 %v282_v1 }
   0x6   :  { %228 = vmatpush3.bf16.msra.mxu0 %v252_v2 }
   0x7   :  { %229 = vmatprep.subr.bf16.mxu0 %v282_v1 }
   0x8   :  { %10 = vsyncpa [#allocation3], 0  ;;  %v23_v11 = vpack.c.bf16 %v22_v10, %v22_v10  ;;  %238 = vmatpush3.bf16.msra.mxu1 %v255_v8  ;;  %vm54_vm3 = vcmask 334848   ;;  %v256_v12 = vld [vmem:[%s363_s3 + $0x10] sm:$0xff]   ;;  %v257_v13 = vld [vmem:[%s363_s3 + $0x18] sm:$0xff]   ;;  %vm146_vm4 = vcmask 523264  }
   0x9   :  { %239 = vmatprep.subr.bf16.mxu1 %v282_v1  ;;  %v205_v14 = vld [vmem:[%s362_s2] ss:$0 sm:$0xff]  ;;  %s285_s11 = smov [#allocation2]  }
   0xa   :  { %230 = vmatpush3.bf16.msra.mxu0 %v63_v9  ;;  %v210_v22 = vld [vmem:[%s364_s4] ss:$0 sm:$0xff]  ;;  %s197_s3 = sshll.u32 %s285_s11, 4  ;;  %s198_s3 = int_to_ptr.vmem [resolvable:$true] %s197_s3 }
   0xb   :  { %s258_s2 = scalar_lea.vmem %s198_s3, 128  ;;  %p263_p1 = scmp.lt.s32.totalorder %s198_s3, %s198_s3 }
   0xc   :  { %240 = vmatpush3.bf16.msra.mxu1 %v256_v12  ;;  %p259_p0 = scmp.ne.s32.totalorder %s198_s3, %s258_s2  ;;  %p264_p2 = scmp.lt.s32.totalorder %s258_s2, %s258_s2 }
   0xd   :  { %232 = vmatmul.mubr.msk.bf16.vlgmr.msra.gmra.mrb[0].mxu0 %vm54_vm3, %v23_v11  ;;  %241 = vmatprep.subr.bf16.mxu1 %v282_v1 }
   0xe   :  { %p265_p3 = por %p264_p2, %p263_p1 }
  0x10   :  { %242 = vmatpush3.bf16.msra.mxu1 %v257_v13  ;;  %p266_p4 = pnand %p265_p3, %p259_p0 }
  0xe0   :  { %v99_v15 = vpop.f32.mrb[0].mxu0 }
  0xe1   :  { %v100_v16 = vadd.f32 %v205_v14, %v99_v15  ;;  %v233_v17 = vpop.f32.mrb[1].mxu0 }
  0xe2   :  { %v102_v18 = vpop.f32.mrb[2].mxu0 }
  0xe3   :  { %v105_v19 = vmax.f32 %v100_v16, 0.0  ;;  %v234_v20 = vpop.f32.mrb[3].mxu0 }
  0xe5   :  { %v106_v21 = vpack.c.bf16 %v105_v19, %v105_v19 }
  0xe7   :  { %244 = vmatmul.mubr.msk.bf16.vlgmr.msra.gmra.mrb[0].mxu1 %vm146_vm4, %v106_v21 }
 0x1ba   :  { %v184_v23 = vpop.f32.mrb[0].mxu1 }
 0x1bb   :  { %v185_v24 = vadd.f32 %v210_v22, %v184_v23  ;;  %v245_v25 = vpop.f32.mrb[1].mxu1 }
 0x1bc   :  { %v187_v26 = vpop.f32.mrb[2].mxu1 }
 0x1bd   :  { %190 = vst.msk [vmem:[#allocation2] sm:$0xff] %vm54_vm3, %v185_v24  ;;  %v246_v27 = vpop.f32.mrb[3].mxu1 }
 0x1be   :  { %269 = shalt.err (!%p266_p4)
}
 0x1bf   :  { %s270_s4 = scalar_lea.hbm %s365_s5, 128 }
 0x1c0   :  { %p271_p5 = scmp.ne.s32.totalorder %s365_s5, %s270_s4  ;;  %p274_p6 = scmp.lt.u32.totalorder %s270_s4, %s365_s5 }
 0x1c2   :  { %p276_p7 = pnand %p274_p6, %p271_p5 }
 0x1c4   :  { %279 = shalt.err (!%p276_p7)
}
 0x1c5   :  { %200 = dma.vmem_to_hbm [thread:$0]  %s198_s3, 128, %s365_s5, [#allocation3]  }
 0x1c6   :  { %280 = dma.done.wait [#allocation3], 128  }
 0x1c7   :  { %281 = vsyncadd [#allocation3], 4294967168 }
 0x1c8   :  { %204 = vsyncpa [#allocation3], 1 }

</bundles_post_ra>
